<compile_context>
chip_gen: v7x
topology: tpu7x:2x2x1
jax: 0.10.0
libtpu: 0.0.40
codegen_flags: <defaults>
</compile_context>

<pallas_src>
import functools
import math

import jax
import jax.numpy as jnp
from jax.experimental import pallas as pl
from jax.experimental.pallas import tpu as pltpu


_NEG_BIG = -1e9  # vocab-lane padding value: exp underflows to 0, no inf/nan


def _round_up(x, m):
    return ((x + m - 1) // m) * m


# ----------------------------------------------------------------------------
# Kernel 1: KL(orig || pruned) over the gathered last-token rows.
#
# grid = (num_b_chunks, n_samples); each step processes an (8, V) tile of
# pruned rows against the matching (8, V) tile of orig rows.  orig softmax is
# cached in VMEM scratch at s == 0 and reused for every sample.  Per b-chunk
# partial sums go to a per-chunk output so the b axis can be megacore-parallel.
# ----------------------------------------------------------------------------
def _kl_kernel(pruned_ref, orig_ref, out_ref, sm_ref, c_ref):
    s = pl.program_id(1)

    @pl.when(s == 0)
    def _prep():
        # orig-side softmax work: done ONCE per batch-row chunk, reused for
        # all n_samples pruned rows.
        orig = orig_ref[...].astype(jnp.float32)                     # (TR, Vp)
        om = jnp.max(orig, axis=-1, keepdims=True)
        e = jnp.exp(orig - om)
        sumexp = jnp.sum(e, axis=-1, keepdims=True)
        inv = 1.0 / sumexp                                           # exact
        o_lse = jnp.log(sumexp) + om
        sm_ref[...] = e * inv                                        # softmax(orig)
        # c_b = sum_v softmax(orig) * log_softmax(orig)
        c_ref[...] = inv * jnp.sum(e * orig, axis=-1, keepdims=True) - o_lse
        out_ref[...] = jnp.zeros_like(out_ref)

    # Per-sample work: one exp pass (pruned logsumexp) + one mul + lane-reduce.
    pruned = pruned_ref[...].astype(jnp.float32)                     # (TR, Vp)
    pm = jnp.max(pruned, axis=-1, keepdims=True)
    p_lse = jnp.log(jnp.sum(jnp.exp(pruned - pm), axis=-1, keepdims=True)) + pm
    cross = jnp.sum(sm_ref[...] * pruned, axis=-1, keepdims=True)    # (TR, 1)
    # KL = sum softmax(o) * (o_lp - p_lp) = c - cross + p_lse
    kl_rows = c_ref[...] - cross + p_lse                             # (TR, 1)
    out_ref[...] += jnp.sum(kl_rows, keepdims=True)                  # (1, 1)


def kl_mean_last_token(pruned_logits, orig_logits, last_token_pos, n_samples):
    """mean over (sample, batch) of KL(orig_b || pruned_{s,b}) at the last token."""
    NSB, S, V = pruned_logits.shape
    B, S_o, V_o = orig_logits.shape
    assert S_o == S and V_o == V and NSB == n_samples * B
    ns = n_samples
    pos = last_token_pos.astype(jnp.int32)

    # Wrapper-side gather of ONLY the last-token rows -> tiny dense arrays.
    # (Logits may be bf16; the f32 upcast happens in VMEM inside the kernel.)
    pruned4 = pruned_logits.reshape(ns, B, S, V)
    pruned_rows = jnp.take_along_axis(
        pruned4, pos[None, :, None, None], axis=2)[:, :, 0, :]       # (ns, B, V)
    orig_rows = jnp.take_along_axis(
        orig_logits, pos[:, None, None], axis=1)[:, 0, :]            # (B, V)

    TR = 8                                   # rows per block -> full sublanes
    B_pad = _round_up(B, TR)
    V_pad = _round_up(V, 128)
    if V_pad != V:
        # pad vocab lanes with a large negative: softmax weight exactly 0
        pruned_rows = jnp.pad(pruned_rows, ((0, 0), (0, 0), (0, V_pad - V)),
                              constant_values=_NEG_BIG)
        orig_rows = jnp.pad(orig_rows, ((0, 0), (0, V_pad - V)),
                            constant_values=_NEG_BIG)
    if B_pad != B:
        # zero-logit rows for both pruned and orig -> exactly 0 KL contribution
        pruned_rows = jnp.pad(pruned_rows, ((0, 0), (0, B_pad - B), (0, 0)))
        orig_rows = jnp.pad(orig_rows, ((0, B_pad - B), (0, 0)))

    pruned2d = pruned_rows.reshape(ns * B_pad, V_pad)   # sample-major rows
    num_chunks = B_pad // TR

    partials = pl.pallas_call(
        _kl_kernel,
        out_shape=jax.ShapeDtypeStruct((num_chunks, 1, 1), jnp.float32),
        grid_spec=pltpu.PrefetchScalarGridSpec(
            num_scalar_prefetch=0,
            # b chunk outer / sample inner: the orig chunk's block index is
            # constant across the inner axis -> fetched once per chunk.
            grid=(num_chunks, ns),
            in_specs=[
                # pruned rows of (sample s, batch chunk b): block row index
                # = s * num_chunks + b in the sample-major flattening.
                pl.BlockSpec((TR, V_pad),
                             lambda b, s: (s * num_chunks + b, 0)),
                # orig rows of batch chunk b
                pl.BlockSpec((TR, V_pad), lambda b, s: (b, 0)),
            ],
            # per-chunk resident partial-sum accumulator (squeezed leading dim)
            out_specs=pl.BlockSpec((None, 1, 1), lambda b, s: (b, 0, 0)),
            scratch_shapes=[pltpu.VMEM((TR, V_pad), jnp.float32),   # softmax(orig)
                            pltpu.VMEM((TR, 1), jnp.float32)],      # c_b per row
        ),
        compiler_params=pltpu.CompilerParams(
            # independent b chunks -> megacore-splittable on v7x
            dimension_semantics=("parallel", "arbitrary")),
    )(pruned2d, orig_rows)
    return jnp.sum(partials) / (ns * B)


# ----------------------------------------------------------------------------
# Kernel 2: complexity loss sigmoid(p0 - relu(p1)*log(-e0/e1)) summed, and
#           temperature loss p1^2 summed.  Row-tiled with in-kernel masking
#           of padded parameters (bounded VMEM independent of n_edges).
# ----------------------------------------------------------------------------
def _reg_losses_kernel(p0_ref, p1_ref, cplx_ref, temp_ref, *, hc_const, n_edges):
    i = pl.program_id(0)

    @pl.when(i == 0)
    def _init():
        cplx_ref[...] = jnp.zeros_like(cplx_ref)
        temp_ref[...] = jnp.zeros_like(temp_ref)

    p0 = p0_ref[...]                                        # (R, 128) f32
    p1 = p1_ref[...]
    R = p0.shape[0]
    row = jax.lax.broadcasted_iota(jnp.int32, (R, 128), 0)
    lane = jax.lax.broadcasted_iota(jnp.int32, (R, 128), 1)
    idx = (i * R + row) * 128 + lane
    valid = idx < n_edges                                   # mask padded params

    cplx = jax.nn.sigmoid(p0 - jnp.maximum(p1, 0.0) * hc_const)
    cplx_ref[...] += jnp.sum(jnp.where(valid, cplx, 0.0), keepdims=True)
    temp_ref[...] += jnp.sum(jnp.where(valid, p1 * p1, 0.0), keepdims=True)


def reg_losses(sampling_params, hc_const):
    n_edges = sampling_params.shape[0]
    params = sampling_params.astype(jnp.float32)

    rows = _round_up(n_edges, 1024) // 128        # rows is a multiple of 8
    block_rows = min(rows, 512)                   # (block_rows, 128) tiles
    rows = _round_up(rows, block_rows)
    n_pad = rows * 128
    if n_pad != n_edges:
        params = jnp.pad(params, ((0, n_pad - n_edges), (0, 0)))
    p0 = params[:, 0].reshape(rows, 128)          # lane-dense slabs
    p1 = params[:, 1].reshape(rows, 128)
    n_blocks = rows // block_rows

    kernel = functools.partial(_reg_losses_kernel,
                               hc_const=float(hc_const), n_edges=n_edges)
    cplx, temp = pl.pallas_call(
        kernel,
        out_shape=(jax.ShapeDtypeStruct((1, 1), jnp.float32),
                   jax.ShapeDtypeStruct((1, 1), jnp.float32)),
        grid=(n_blocks,),
        in_specs=[pl.BlockSpec((block_rows, 128), lambda i: (i, 0)),
                  pl.BlockSpec((block_rows, 128), lambda i: (i, 0))],
        out_specs=(pl.BlockSpec((1, 1), lambda i: (0, 0)),
                   pl.BlockSpec((1, 1), lambda i: (0, 0))),
        compiler_params=pltpu.CompilerParams(
            dimension_semantics=("arbitrary",)),
    )(p0, p1)
    return cplx[0, 0], temp[0, 0]


# ----------------------------------------------------------------------------
# EdgePruner.forward equivalent (training-mode path, node_reg == 0,
# parallel_inference == False, inference_mode == False).
# ----------------------------------------------------------------------------
def edge_pruner_forward(pruned_logits, orig_logits, last_token_pos,
                        sampling_params, *, n_samples, lamb, temp_c,
                        hard_concrete_endpoints):
    assert pruned_logits.shape[0] == n_samples * orig_logits.shape[0]

    # final-hook last-token selection + log_softmax + KLDiv.sum(-1).mean()
    kl_mean = kl_mean_last_token(pruned_logits, orig_logits, last_token_pos,
                                 n_samples)

    hc_const = math.log(-hard_concrete_endpoints[0] / hard_concrete_endpoints[1])
    cplx_sum, temp_sum = reg_losses(sampling_params, hc_const)

    loss = kl_mean + lamb * cplx_sum + temp_c * temp_sum
    return loss, sampling_params


# ----------------------------------------------------------------------------
# Plain-JAX reference (for correctness check of the Pallas path).
# ----------------------------------------------------------------------------
def _reference_loss(pruned_logits, orig_logits, last_token_pos, sampling_params,
                    n_samples, lamb, temp_c, hce):
    B, S, V = orig_logits.shape
    idx = jnp.arange(B)
    pruned4 = pruned_logits.reshape(n_samples, B, S, V)
    pruned_rows = pruned4[:, idx, last_token_pos, :]          # (ns, B, V)
    orig_rows = orig_logits[idx, last_token_pos, :]           # (B, V)
    pruned_lp = jax.nn.log_softmax(pruned_rows, axis=-1)
    orig_lp = jax.nn.log_softmax(orig_rows, axis=-1)
    kl = jnp.sum(jnp.exp(orig_lp)[None] * (orig_lp[None] - pruned_lp), axis=-1)
    hc = math.log(-hce[0] / hce[1])
    cplx = jax.nn.sigmoid(sampling_params[:, 0]
                          - jax.nn.relu(sampling_params[:, 1]) * hc)
    temp = jnp.square(sampling_params[:, 1])
    return kl.mean() + lamb * cplx.sum() + temp_c * temp.sum()


if __name__ == "__main__":
    key = jax.random.PRNGKey(0)
    ks = jax.random.split(key, 8)

    # small shapes consistent with the module's forward
    B, S, V = 2, 8, 128               # batch, seq, vocab (vocab on lane axis)
    n_samples = 2                     # pruning_cfg.n_samples
    n_layers, n_heads, d_model = 2, 4, 32
    n_edges = 1024                    # total edge-mask sampling params

    batch = jax.random.randint(ks[0], (B, S), 0, V)                 # token ids (shape only)
    last_token_pos = jax.random.randint(ks[1], (B,), 0, S)

    # stand-ins for base_model(batch.repeat(n_samples,1)) and base_model(batch)
    # outputs (see TODO above); deterministic via PRNGKey(0).
    pruned_logits = jax.random.normal(ks[2], (n_samples * B, S, V), jnp.float32)
    orig_logits = jax.random.normal(ks[3], (B, S, V), jnp.float32)

    # deterministic parameter init (used only by hook machinery in the original
    # module; initialized here for shape fidelity).
    modal_attention = 0.02 * jax.random.normal(ks[4], (n_layers, n_heads, d_model))
    modal_mlp = 0.02 * jax.random.normal(ks[5], (n_layers + 1, d_model))

    # mask_sampler() output: (num_edges, 2) -> [logit, temperature]
    all_sampling_params = jax.random.normal(ks[6], (n_edges, 2), jnp.float32)

    lamb = 1e-4                              # pruning_cfg.lamb
    temp_c = 1e-3                            # pruning_cfg.temp_scheduler(log)
    hce = (-0.1, 1.1)                        # pruning_cfg.hard_concrete_endpoints

    loss, params_out = edge_pruner_forward(
        pruned_logits, orig_logits, last_token_pos, all_sampling_params,
        n_samples=n_samples, lamb=lamb, temp_c=temp_c,
        hard_concrete_endpoints=hce)
    jax.block_until_ready(loss)
    jax.block_until_ready(params_out)

    loss_ref = _reference_loss(pruned_logits, orig_logits, last_token_pos,
                               all_sampling_params, n_samples, lamb, temp_c, hce)
    jax.block_until_ready(loss_ref)
    err = abs(float(loss) - float(loss_ref))
    tol = 1e-4 + 1e-4 * abs(float(loss_ref))
    assert err < tol, (float(loss), float(loss_ref), err)

    print("KERNEL_OK")
</pallas_src>

<mosaic_0001>
module attributes {stable_mosaic.version = 11 : i64} {
  func.func @_kl_kernel(%arg0: i32, %arg1: i32, %arg2: memref<8x128xf32, #tpu.memory_space<vmem>>, %arg3: memref<8x128xf32, #tpu.memory_space<vmem>>, %arg4: memref<1x1x1xf32, #tpu.memory_space<vmem>>, %arg5: memref<8x128xf32, #tpu.memory_space<vmem>>, %arg6: memref<8x1xf32, #tpu.memory_space<vmem>>) attributes {dimension_semantics = [#tpu.dimension_semantics<parallel>, #tpu.dimension_semantics<arbitrary>], iteration_bounds = array<i64: 1, 2>, scalar_prefetch = 0 : i64, scratch_operands = 2 : i64, tpu.core_type = #tpu.core_type<tc>, window_params = [{transform_indices = @transform_0, window_bounds = array<i64: 8, 128>}, {transform_indices = @transform_1, window_bounds = array<i64: 8, 128>}, {transform_indices = @transform_2, window_bounds = array<i64: 1, 1, 1>}]} {
    %c0_i32 = arith.constant 0 : i32
    %0 = arith.cmpi eq, %arg1, %c0_i32 : i32
    %1 = arith.extui %0 : i1 to i32
    %c0_i32_0 = arith.constant 0 : i32
    %2 = arith.cmpi ne, %1, %c0_i32_0 : i32
    scf.if %2 {
      %c0_15 = arith.constant 0 : index
      %c0_16 = arith.constant 0 : index
      %31 = vector.load %arg3[%c0_15, %c0_16] : memref<8x128xf32, #tpu.memory_space<vmem>>, vector<8x128xf32>
      %cst_17 = arith.constant dense<0xFF800000> : vector<8xf32>
      %32 = vector.multi_reduction <maximumf>, %31, %cst_17 [1] : vector<8x128xf32> to vector<8xf32>
      %33 = vector.shape_cast %32 : vector<8xf32> to vector<8x1xf32>
      %34 = vector.broadcast %33 : vector<8x1xf32> to vector<8x128xf32>
      %35 = arith.subf %31, %34 : vector<8x128xf32>
      %36 = math.exp %35 : vector<8x128xf32>
      %cst_18 = arith.constant dense<0.000000e+00> : vector<8xf32>
      %37 = vector.multi_reduction <add>, %36, %cst_18 [1] : vector<8x128xf32> to vector<8xf32>
      %38 = vector.shape_cast %37 : vector<8xf32> to vector<8x1xf32>
      %cst_19 = arith.constant 1.000000e+00 : f32
      %39 = vector.broadcast %cst_19 : f32 to vector<8x1xf32>
      %40 = arith.divf %39, %38 : vector<8x1xf32>
      %41 = math.log %38 : vector<8x1xf32>
      %42 = arith.addf %41, %33 : vector<8x1xf32>
      %43 = vector.broadcast %40 : vector<8x1xf32> to vector<8x128xf32>
      %44 = arith.mulf %36, %43 : vector<8x128xf32>
      %c0_20 = arith.constant 0 : index
      %c0_21 = arith.constant 0 : index
      %45 = vector.load %arg5[%c0_20, %c0_21] : memref<8x128xf32, #tpu.memory_space<vmem>>, vector<8x128xf32>
      tpu.vector_store %arg5[%c0_20, %c0_21], %44 {strides = array<i32>} : memref<8x128xf32, #tpu.memory_space<vmem>>, vector<8x128xf32>,
      %46 = arith.mulf %36, %31 : vector<8x128xf32>
      %cst_22 = arith.constant dense<0.000000e+00> : vector<8xf32>
      %47 = vector.multi_reduction <add>, %46, %cst_22 [1] : vector<8x128xf32> to vector<8xf32>
      %48 = vector.shape_cast %47 : vector<8xf32> to vector<8x1xf32>
      %49 = arith.mulf %40, %48 : vector<8x1xf32>
      %50 = arith.subf %49, %42 : vector<8x1xf32>
      %c0_23 = arith.constant 0 : index
      %c0_24 = arith.constant 0 : index
      %51 = vector.load %arg6[%c0_23, %c0_24] : memref<8x1xf32, #tpu.memory_space<vmem>>, vector<8x1xf32>
      tpu.vector_store %arg6[%c0_23, %c0_24], %50 {strides = array<i32>} : memref<8x1xf32, #tpu.memory_space<vmem>>, vector<8x1xf32>,
      %cst_25 = arith.constant 0.000000e+00 : f32
      %52 = vector.broadcast %cst_25 : f32 to vector<1x1xf32>
      %c0_26 = arith.constant 0 : index
      %c0_27 = arith.constant 0 : index
      %c0_28 = arith.constant 0 : index
      %53 = vector.load %arg4[%c0_26, %c0_27, %c0_28] : memref<1x1x1xf32, #tpu.memory_space<vmem>>, vector<1x1x1xf32>
      %54 = vector.shape_cast %53 : vector<1x1x1xf32> to vector<1x1xf32>
      %55 = vector.shape_cast %52 : vector<1x1xf32> to vector<1x1x1xf32>
      tpu.vector_store %arg4[%c0_26, %c0_27, %c0_28], %55 {strides = array<i32>} : memref<1x1x1xf32, #tpu.memory_space<vmem>>, vector<1x1x1xf32>,
    } else {
    }
    %c0 = arith.constant 0 : index
    %c0_1 = arith.constant 0 : index
    %3 = vector.load %arg2[%c0, %c0_1] : memref<8x128xf32, #tpu.memory_space<vmem>>, vector<8x128xf32>
    %cst = arith.constant dense<0xFF800000> : vector<8xf32>
    %4 = vector.multi_reduction <maximumf>, %3, %cst [1] : vector<8x128xf32> to vector<8xf32>
    %5 = vector.shape_cast %4 : vector<8xf32> to vector<8x1xf32>
    %6 = vector.broadcast %5 : vector<8x1xf32> to vector<8x128xf32>
    %7 = arith.subf %3, %6 : vector<8x128xf32>
    %8 = math.exp %7 : vector<8x128xf32>
    %cst_2 = arith.constant dense<0.000000e+00> : vector<8xf32>
    %9 = vector.multi_reduction <add>, %8, %cst_2 [1] : vector<8x128xf32> to vector<8xf32>
    %10 = vector.shape_cast %9 : vector<8xf32> to vector<8x1xf32>
    %11 = math.log %10 : vector<8x1xf32>
    %12 = arith.addf %11, %5 : vector<8x1xf32>
    %c0_3 = arith.constant 0 : index
    %c0_4 = arith.constant 0 : index
    %13 = vector.load %arg5[%c0_3, %c0_4] : memref<8x128xf32, #tpu.memory_space<vmem>>, vector<8x128xf32>
    %14 = arith.mulf %13, %3 : vector<8x128xf32>
    %cst_5 = arith.constant dense<0.000000e+00> : vector<8xf32>
    %15 = vector.multi_reduction <add>, %14, %cst_5 [1] : vector<8x128xf32> to vector<8xf32>
    %16 = vector.shape_cast %15 : vector<8xf32> to vector<8x1xf32>
    %c0_6 = arith.constant 0 : index
    %c0_7 = arith.constant 0 : index
    %17 = vector.load %arg6[%c0_6, %c0_7] : memref<8x1xf32, #tpu.memory_space<vmem>>, vector<8x1xf32>
    %18 = arith.subf %17, %16 : vector<8x1xf32>
    %19 = arith.addf %18, %12 : vector<8x1xf32>
    %c0_8 = arith.constant 0 : index
    %c0_9 = arith.constant 0 : index
    %c0_10 = arith.constant 0 : index
    %20 = vector.load %arg4[%c0_8, %c0_9, %c0_10] : memref<1x1x1xf32, #tpu.memory_space<vmem>>, vector<1x1x1xf32>
    %21 = vector.shape_cast %20 : vector<1x1x1xf32> to vector<1x1xf32>
    %22 = vector.shape_cast %19 : vector<8x1xf32> to vector<1x8x1xf32>
    %cst_11 = arith.constant dense<0.000000e+00> : vector<1xf32>
    %23 = vector.multi_reduction <add>, %22, %cst_11 [1, 2] : vector<1x8x1xf32> to vector<1xf32>
    %24 = vector.shape_cast %23 : vector<1xf32> to vector<1x1x1xf32>
    %25 = vector.extract %24[0, 0, 0] : f32 from vector<1x1x1xf32>
    %26 = vector.broadcast %25 : f32 to vector<1x1xf32>
    %27 = arith.addf %21, %26 : vector<1x1xf32>
    %c0_12 = arith.constant 0 : index
    %c0_13 = arith.constant 0 : index
    %c0_14 = arith.constant 0 : index
    %28 = vector.load %arg4[%c0_12, %c0_13, %c0_14] : memref<1x1x1xf32, #tpu.memory_space<vmem>>, vector<1x1x1xf32>
    %29 = vector.shape_cast %28 : vector<1x1x1xf32> to vector<1x1xf32>
    %30 = vector.shape_cast %27 : vector<1x1xf32> to vector<1x1x1xf32>
    tpu.vector_store %arg4[%c0_12, %c0_13, %c0_14], %30 {strides = array<i32>} : memref<1x1x1xf32, #tpu.memory_space<vmem>>, vector<1x1x1xf32>,
    return
  }
  func.func @transform_0(%arg0: i32, %arg1: i32) -> (i32, i32) {
    %c1_i32 = arith.constant 1 : i32
    %0 = arith.muli %arg1, %c1_i32 : i32
    %1 = arith.addi %0, %arg0 : i32
    %c0_i32 = arith.constant 0 : i32
    %c0_i32_0 = arith.constant 0 : i32
    return %1, %c0_i32 : i32, i32
  }
  func.func @transform_1(%arg0: i32, %arg1: i32) -> (i32, i32) {
    %c0_i32 = arith.constant 0 : i32
    %c0_i32_0 = arith.constant 0 : i32
    return %arg0, %c0_i32 : i32, i32
  }
  func.func @transform_2(%arg0: i32, %arg1: i32) -> (i32, i32, i32) {
    %c0_i32 = arith.constant 0 : i32
    %c0_i32_0 = arith.constant 0 : i32
    %c0_i32_1 = arith.constant 0 : i32
    return %arg0, %c0_i32, %c0_i32_0 : i32, i32, i32
  }
}

</mosaic_0001>

<bundles_post_ra>
// kernel: tpu_custom_call.1
= control target key start
LH: loop header
LB: loop body
LE: loop exit
PB: predicated region body
PF: predicated region fallthrough
CT: control target
= control target key end

     0   :  { %7 = vsyncpa [#allocation5], 0  ;;  %s790_s0 = inlined_call_operand.hbm [shape: f32[16,128], index: 0, kind: input, shape index: {}]   ;;  %s791_s1 = inlined_call_operand.hbm [shape: f32[8,128], index: 1, kind: input, shape index: {}]   ;;  %s792_s2 = inlined_call_operand.hbm [shape: f32[1,1,1], index: 2, kind: output, shape index: {}]  }
   0x1   :  { %9 = vsyncpa [#allocation5 + $0x1], 0 }
   0x2   :  { %10 = vsyncpa [#allocation8], 0 }
   0x3   :  { %11 = vsyncpa [#allocation6], 0  ;;  %s596_s9 = smov 0   ;;  %s598_s10 = smov 0  }
   0x4   :  { %s600_s11 = smov 0   ;;  %s602_s12 = smov 0  }
   0x5   :  { %s604_s13 = smov 0   ;;  %s606_s14 = smov 0  }
   0x6 LB: > { %s333_s15 = sadd.s32 4294967295, %s575_s14   ;;  %p51_p0 = scmp.ne.s32.totalorder %s559_s10, %s555_s9  ;;  %s575_s14 = sphi %s606_s14, %s17_s14   ;;  %s571_s13 = sphi %s604_s13, %s812_s13   ;;  %s567_s12 = sphi %s602_s12, %s811_s12   ;;  %s563_s11 = sphi %s600_s11, %s810_s11   ;;  %s559_s10 = sphi %s598_s10, %s809_s10   ;;  %s555_s9 = sphi %s596_s9, %s808_s9  }
   0x7   : > { %p628_p1 = scmp.eq.s32.totalorder %s333_s15, 0  ;;  %p334_p2 = scmp.ge.s32.totalorder %s575_s14, 1 }
   0x8   : > { %p114_p3 = scmp.lt.s32.totalorder %s575_s14, 3  ;;  %s577_s19 = smov [#allocation7]  }
   0x9   : > { %s797_s16 = scalar_select %p628_p1, 1, 0 }
   0xa   : > { %p636_p4 = por %p628_p1, %p51_p0  ;;  %p640_p5 = pnand %p334_p2, %p114_p3 }
   0xb   : > { %s129_s20 = sshll.u32 %s577_s19, 4  ;;  %s26_s22 = sadd.s32 1, %s571_s13  ;;  %s130_s20 = int_to_ptr.vmem [resolvable:$true] %s129_s20 }
   0xc   : > { %s798_s17 = scalar_select %p636_p4, 1, 0 }
   0xd   : > { %s799_s18 = scalar_select %p640_p5, 1, 0 }
   0xe   : > { %p359_p6 = pneg %p640_p5  ;;  %s38_s23 = sadd.s32 1, %s563_s11 }
   0xf   : > { %p654_p8 = scmp.ge.s32.totalorder %s26_s22, 2  ;;  %s433_s27 = scalar_lea.hbm %s791_s1, 128 }
  0x10   : > { %p648_p7 = pnand %p359_p6, %p628_p1  ;;  %p434_p9 = scmp.ne.s32.totalorder %s791_s1, %s433_s27 }
  0x11   : > { %s801_s24 = scalar_select %p654_p8, 1, 0 }
  0x12   : > { %p435_p10 = pneg %p648_p7  ;;  %p440_p13 = scmp.lt.u32.totalorder %s433_s27, %s791_s1 }
  0x14   : > { %p436_p11 = pnand %p435_p10, %p434_p9 }
  0x16   : > { %p437_p12 = pneg %p436_p11 }
  0x18   : > { %p442_p0 = pnand %p440_p13, %p437_p12 }
  0x1a   : > { %445 = shalt.err (!%p442_p0)
}
  0x1b   : > { %s446_s4 = scalar_lea.vmem %s130_s20, 128  ;;  %p454_p1 = scmp.lt.s32.totalorder %s130_s20, %s130_s20 }
  0x1c   : > { %p447_p2 = scmp.ne.s32.totalorder %s130_s20, %s446_s4  ;;  %p455_p4 = scmp.lt.s32.totalorder %s446_s4, %s446_s4 }
  0x1e   : > { %p449_p3 = pnand %p447_p2, %p435_p10  ;;  %p456_p5 = por %p455_p4, %p454_p1 }
  0x20   : > { %p450_p6 = pneg %p449_p3 }
  0x22   : > { %p457_p8 = pnand %p456_p5, %p450_p6 }
  0x24   : > { %460 = shalt.err (!%p457_p8)
}
  0x25   : > { %362 = dma.hbm_to_vmem [thread:$0]  (!%p648_p7), %s791_s1, 128, %s130_s20, [#allocation8]  }
  0x26   : > { %p802_p9 = scmp.ne.s32.totalorder %s801_s24, 0  ;;  %p45_p1 = scmp.ne.s32.totalorder %s563_s11, %s559_s10 }
  0x27   : > { %p46_p4 = scmp.eq.s32.totalorder %s575_s14, 0  ;;  %p368_p5 = scmp.lt.s32.totalorder %s575_s14, 2 }
  0x28   : > { %s814_s22 = smov (%p802_p9, %s26_s22), 0  ;;  %s140_s8 = sand.u32 1, %s563_s11  }
  0x29   : > { %s35_s7 = ssub.s32 %s571_s13, %s814_s22  ;;  %p47_p10 = por %p46_p4, %p45_p1 }
  0x2a   : > { %p36_p8 = scmp.eq.s32.totalorder %s35_s7, 0  ;;  %s338_s9 = sshll.u32 %s571_s13, 7 }
  0x2b   : > { %s337_s21 = sshll.u32 %s140_s8, 3  ;;  %s694_s20 = scalar_lea.hbm %s790_s0, %s338_s9 }
  0x2c   : > { %s689_s19 = scalar_select %p36_p8, %s563_s11, %s38_s23  }
  0x2d   : > { %s144_s24 = scalar_lea.vmem [#allocation4], %s337_s21  ;;  %p696_p7 = pnand %p368_p5, %p47_p10 }
  0x2e   : > { %s152_s27 = sshll.u32 %s144_s24, 4  ;;  %s141_s23 = scalar_lea.sflag [#allocation5], %s140_s8  ;;  %s700_s27 = int_to_ptr.vmem [resolvable:$true] %s152_s27 }
  0x2f   : > { %s461_s29 = scalar_lea.hbm %s694_s20, 128  ;;  %p463_p12 = pneg %p696_p7 }
  0x30   : > { %p462_p11 = scmp.ne.s32.totalorder %s694_s20, %s461_s29  ;;  %s466_s4 = scalar_lea.hbm %s790_s0, 256 }
  0x31   : > { %p467_p2 = scmp.lt.u32.totalorder %s694_s20, %s790_s0  ;;  %p468_p3 = scmp.lt.u32.totalorder %s466_s4, %s461_s29 }
  0x32   : > { %p464_p13 = pnand %p463_p12, %p462_p11  ;;  %p470_p9 = scmp.lt.u32.totalorder %s461_s29, %s694_s20 }
  0x33   : > { %p469_p6 = por %p468_p3, %p467_p2 }
  0x34   : > { %p465_p0 = pneg %p464_p13 }
  0x35   : > { %p471_p1 = por %p470_p9, %p469_p6 }
  0x37   : > { %p472_p4 = pnand %p471_p1, %p465_p0 }
  0x39   : > { %475 = shalt.err (!%p472_p4)
}
  0x3a   : > { %s476_s7 = scalar_lea.vmem %s700_s27, 128  ;;  %s578_s8 = smov [#allocation4]  }
  0x3b   : > { %p477_p5 = scmp.ne.s32.totalorder %s700_s27, %s476_s7  ;;  %s481_s9 = sshll.u32 %s578_s8, 4  ;;  %s482_s9 = int_to_ptr.vmem [resolvable:$false] %s481_s9 }
  0x3c   : > { %s483_s21 = scalar_lea.vmem %s482_s9, 256  ;;  %p484_p11 = scmp.lt.s32.totalorder %s700_s27, %s482_s9 }
  0x3d   : > { %p479_p8 = pnand %p477_p5, %p463_p12  ;;  %p485_p13 = scmp.lt.s32.totalorder %s483_s21, %s476_s7 }
  0x3f   : > { %p480_p10 = pneg %p479_p8  ;;  %p486_p2 = por %p485_p13, %p484_p11 }
  0x41   : > { %p487_p3 = pnand %p486_p2, %p480_p10 }
  0x43   : > { %490 = shalt.err (!%p487_p3)
}
  0x44   : > { %366 = dma.hbm_to_vmem [thread:$0]  (!%p696_p7), %s694_s20, 128, %s700_s27, %s141_s23  }
  0x45   : > { %p804_p0 = scmp.ne.s32.totalorder %s799_s18, 0 }
  0x46   : > { %s163_s25 = sand.u32 (!%p804_p0), 1, %s559_s10   ;;  %p805_p12 = scmp.ne.s32.totalorder (!%p804_p0), %s798_s17, 0 }
  0x47   : > { %161 = sbr.rel (%p804_p0) target bundleno = 942 (0x3ae), region = 28  ;;  %s730_s26 = sshll.u32 (!%p804_p0), %s163_s25, 3 }
  0x48   : > { %s164_s24 = scalar_lea.sflag (!%p804_p0), [#allocation5], %s163_s25  ;;  %s167_s29 = scalar_lea.vmem (!%p804_p0), [#allocation4], %s730_s26 }
  0x4e   : > { %542 = dma.done.wait (%p805_p12), %s164_s24, 128  }
  0x4f   : > { %544 = vsyncadd (%p805_p12), %s164_s24, 4294967168  ;;  %p806_p6 = scmp.ne.s32.totalorder %s797_s16, 0 }
  0x51   : > { %546 = dma.done.wait (%p806_p6), [#allocation8], 128  }
  0x52   : > { %548 = vsyncadd (%p806_p6), [#allocation8], 4294967168  ;;  %p342_p7 = scmp.ne.s32.totalorder %s567_s12, 0 }
  0x53   : > { %v192_v0 = vld [vmem:[#allocation7] sm:$0xff] (!%p342_p7)  ;;  %vm214_vm0 = vcmask (!%p342_p7), 0   ;;  %v579_v6 = vmov (!%p342_p7), 0.0   ;;  %vm212_vm1 = vcmask (!%p342_p7), 7168  }
  0x54   : > { %191 = sbr.rel (%p342_p7) target bundleno = 402 (0x192), region = 40  ;;  %193 = vmax.xlane.f32.xlu0 (!%p342_p7), %v192_v0  ;;  %215 = vst.msk [vmem:[#allocation9] sm:$0x1] (!%p342_p7), %vm214_vm0, %v579_v6 }
  0xe1   : > { %v194_v1 = vpop.xlane.xlu0 %193 }
  0xe2   : > { %v195_v2 = vsub.f32 %v192_v0, %v194_v1 }
  0xe4   : > { %v196_v3 = vmul.f32 1.442695, %v195_v2 }
  0xe6   : > { %423 = vpow2.f32 %v196_v3 }
  0xf0   : > { %v424_v4 = vpop.eup %423 }
  0xf1   : > { %198 = vadd.xlane.f32.xlu0 %v424_v4  ;;  %v207_v5 = vmul.f32 %v424_v4, %v192_v0 }
  0xf3   : > { %208 = vadd.xlane.f32.xlu1 %v207_v5 }
 0x17e   : > { %v199_v7 = vpop.xlane.xlu0 %198 }
 0x17f   : > { %425 = vrcp.f32 %v199_v7 }
 0x180   : > { %427 = vlog2.f32 %v199_v7  ;;  %v209_v12 = vpop.xlane.xlu1 %208 }
 0x189   : > { %v426_v8 = vpop.eup %425 }
 0x18a   : > { %v428_v9 = vpop.eup %427  ;;  %v205_v10 = vmul.f32 %v426_v8, %v424_v4  ;;  %v210_v14 = vmul.f32 %v426_v8, %v209_v12 }
 0x18b   : > { %v203_v11 = vmul.f32 0.6931472, %v428_v9 }
 0x18c   : > { %206 = vst [vmem:[#allocation2] sm:$0xff] %v205_v10 }
 0x18d   : > { %v204_v13 = vadd.f32 %v203_v11, %v194_v1 }
 0x18f   : > { %v211_v15 = vsub.f32 %v210_v14, %v204_v13 }
 0x191   : > { %213 = vst.msk [vmem:[#allocation3] sm:$0xff] %vm212_vm1, %v211_v15 }
 0x192 PF: > { %v216_v16 = vld [vmem:[%s167_s29] sm:$0xff]  ;;  %vm235_vm2 = vcmask 7168   ;;  %v234_v39 = vld [vmem:[#allocation9] sm:$0x1]  ;;  %s580_s12 = smov [#allocation9]   ;;  %vm248_vm3 = vcmask 0  }
 0x193   : > { %217 = vmax.xlane.f32.xlu0 %v216_v16  ;;  %v227_v17 = vld [vmem:[#allocation2] sm:$0xff]  ;;  %s259_s16 = sshll.u32 %s580_s12, 4  ;;  %p746_p9 = scmp.eq.s32.totalorder %s333_s15, 1  ;;  %s260_s16 = int_to_ptr.vmem [resolvable:$true] %s259_s16 }
 0x194   : > { %v228_v18 = vmul.f32 %v227_v17, %v216_v16  ;;  %s491_s20 = scalar_lea.vmem %s260_s16, 16  ;;  %s497_s27 = scalar_lea.vmem %s260_s16, 32 }
 0x195   : > { %p492_p1 = scmp.ne.s32.totalorder %s260_s16, %s491_s20  ;;  %p498_p8 = scmp.lt.s32.totalorder %s260_s16, %s260_s16 }
 0x196   : > { %229 = vadd.xlane.f32.xlu1 %v228_v18  ;;  %p499_p10 = scmp.lt.s32.totalorder %s497_s27, %s491_s20 }
 0x197   : > { %p493_p4 = pnand %p492_p1, %p746_p9 }
 0x198   : > { %v231_v24 = vld [vmem:[#allocation3] sm:$0xff]  ;;  %p500_p11 = por %p499_p10, %p498_p8 }
 0x199   : > { %p494_p5 = pneg %p493_p4 }
 0x19b   : > { %p501_p13 = pnand %p500_p11, %p494_p5 }
 0x220   : > { %v218_v19 = vpop.xlane.xlu0 %217 }
 0x221   : > { %v219_v20 = vsub.f32 %v216_v16, %v218_v19 }
 0x223   : > { %v220_v21 = vmul.f32 1.442695, %v219_v20  ;;  %v230_v25 = vpop.xlane.xlu1 %229 }
 0x224   : > { %v232_v28 = vsub.f32 %v231_v24, %v230_v25 }
 0x225   : > { %429 = vpow2.f32 %v220_v21 }
 0x22f   : > { %v430_v22 = vpop.eup %429 }
 0x230   : > { %222 = vadd.xlane.f32.xlu0 %v430_v22 }
 0x2bd   : > { %v223_v23 = vpop.xlane.xlu0 %222 }
 0x2be   : > { %431 = vlog2.f32 %v223_v23 }
 0x2c8   : > { %v432_v26 = vpop.eup %431 }
 0x2c9   : > { %v225_v27 = vmul.f32 0.6931472, %v432_v26 }
 0x2cb   : > { %v226_v29 = vadd.f32 %v225_v27, %v218_v19 }
 0x2cd   : > { %v233_v30 = vadd.f32 %v232_v28, %v226_v29 }
 0x2cf   : > { %v236_v31 = vsel %vm235_vm2, %v233_v30, 0.0 }
 0x2d0   : > { %237 = vadd.xlane.f32.xlu1 %v236_v31 }
 0x35d   : > { %v238_v32 = vpop.xlane.xlu1 %237 }
 0x35e   : > { %v239_v33 = vrot.slane %v238_v32, 4 }
 0x360   : > { %v240_v34 = vadd.f32 %v239_v33, %v238_v32 }
 0x362   : > { %v241_v35 = vrot.slane %v240_v34, 2 }
 0x364   : > { %v242_v36 = vadd.f32 %v241_v35, %v240_v34 }
 0x366   : > { %v243_v37 = vrot.slane %v242_v36, 1 }
 0x368   : > { %v244_v38 = vadd.f32 %v243_v37, %v242_v36 }
 0x36a   : > { %347 = vpush %v244_v38 }
 0x39b   : > { %s348_s17 = spop %347 }
 0x39c   : > { %v246_v40 = vstv %s348_s17 }
 0x39d   : > { %v247_v41 = vadd.f32 %v246_v40, %v234_v39 }
 0x39f   : > { %249 = vst.msk [vmem:[#allocation9] sm:$0x1] %vm248_vm3, %v247_v41 }
 0x3a0   : > { %504 = shalt.err (!%p501_p13)
}
 0x3a1   : > { %s505_s23 = scalar_lea.hbm %s792_s2, 16 }
 0x3a2   : > { %p506_p2 = scmp.ne.s32.totalorder %s792_s2, %s505_s23  ;;  %p511_p12 = scmp.lt.u32.totalorder %s505_s23, %s792_s2 }
 0x3a4   : > { %p507_p3 = pnand %p506_p2, %p746_p9 }
 0x3a6   : > { %p508_p0 = pneg %p507_p3 }
 0x3a8   : > { %p513_p6 = pnand %p511_p12, %p508_p0 }
 0x3aa   : > { %516 = shalt.err (!%p513_p6)
}
 0x3ab   : > { %356 = dma.vmem_to_hbm [thread:$0]  (%p746_p9), %s260_s16, 16, %s792_s2, [#allocation6]  }
 0x3ac   : > { %550 = dma.done.wait (%p746_p9), [#allocation6], 16  }
 0x3ad   : > { %552 = vsyncadd (%p746_p9), [#allocation6], 4294967280 }
 0x3ae PF: > { %s17_s14 = sadd.s32 1, %s575_s14   ;;  %s808_s9 = smov %s559_s10 }
 0x3af   : > { %p14_p7 = scmp.ge.s32.totalorder %s17_s14, 4   ;;  %s809_s10 = smov %s563_s11 }
 0x3b0   : > { %s810_s11 = smov %s689_s19  ;;  %s811_s12 = smov %s571_s13 }
 0x3b1   : > { %s812_s13 = smov %s814_s22  ;;  %16 = sbr.rel (!%p14_p7) target bundleno = 6 (0x6), region = 75 }
 0x3b8   :  { %272 = vsyncpa [#allocation5], 1 }
 0x3b9   :  { %274 = vsyncpa [#allocation5 + $0x1], 1 }
 0x3ba   :  { %275 = vsyncpa [#allocation8], 1 }
 0x3bb   :  { %276 = vsyncpa [#allocation6], 1 }
 0x3bc   :  { %278 = vsyncpa [#allocation6 + $0x1], 1 }

</bundles_post_ra>
